<compile_context>
chip_gen: v7x
topology: tpu7x:2x2x1
jax: 0.10.0
libtpu: 0.0.40
codegen_flags: <defaults>
</compile_context>

<pallas_src>
import functools

import jax
import jax.numpy as jnp
from jax.experimental import pallas as pl
from jax.experimental.pallas import tpu as pltpu


def _wce_kernel(w_ref, x_ref, t_ref, loss_ref, wsum_ref, *,
                n_classes, n_valid_rows, rows_per_tile, needs_mask):
    x = x_ref[0]                                  # (C, TR, 128) logits tile
    t = t_ref[0]                                  # (TR, 128)    int32 targets

    xf = x.astype(jnp.float32)
    # Numerically stable log-sum-exp over the class (leading, non-layout) axis.
    m = jnp.max(xf, axis=0)                       # (TR, 128)
    z = xf - m                                    # (C, TR, 128)
    sum_e = jnp.sum(jnp.exp(z), axis=0)           # (TR, 128)
    log_sum_e = jnp.log(sum_e)                    # (TR, 128)

    # Gather target logit (as z_t = x_t - m) and target class weight with a
    # select chain: 1 compare + 2 selects per class per position.
    # Out-of-range targets (padding sentinel C, negatives) match no class and
    # keep w_t == 0, so they contribute nothing to either sum.
    pos_shape = z.shape[1:]                       # (TR, 128)
    z_t = jnp.zeros(pos_shape, jnp.float32)
    w_t = jnp.zeros(pos_shape, jnp.float32)
    for c in range(n_classes):
        hit = t == c                              # (TR, 128) bool
        z_t = jnp.where(hit, z[c], z_t)
        w_t = jnp.where(hit, w_ref[c], w_t)       # w_ref[c]: SMEM scalar

    nll = log_sum_e - z_t                         # = lse - x_t
    loss_pos = w_t * nll

    if needs_mask:  # static flag: only when the grid overshoots R
        row = (pl.program_id(1) * rows_per_tile
               + jax.lax.broadcasted_iota(jnp.int32, pos_shape, 0))
        valid = row < n_valid_rows
        loss_pos = jnp.where(valid, loss_pos, 0.0)   # kills any NaN/Inf garbage
        w_t = jnp.where(valid, w_t, 0.0)

    loss_ref[...] = jnp.sum(loss_pos).reshape(1, 1, 1, 1)
    wsum_ref[...] = jnp.sum(w_t).reshape(1, 1, 1, 1)


@jax.jit
def weighted_cross_entropy(logits_nchw, targets_nhw, class_weights):
    """Forward of WeightedCrossEntropyLoss (reduction='mean')."""
    N, C, H, W = logits_nchw.shape
    S = H * W

    x = logits_nchw.reshape(N, C, S)
    t = targets_nhw.reshape(N, S).astype(jnp.int32)

    # Lane-dense spatial layout: S -> (R, 128).  Free reshape when S % 128 == 0;
    # otherwise a single pad copy (pad targets with class C -> zero weight).
    s_pad = (-S) % 128
    if s_pad:
        x = jnp.pad(x, ((0, 0), (0, 0), (0, s_pad)))
        t = jnp.pad(t, ((0, 0), (0, s_pad)), constant_values=C)
    R = (S + s_pad) // 128
    x = x.reshape(N, C, R, 128)
    t = t.reshape(N, R, 128)
    w = class_weights.astype(jnp.float32).reshape(C)

    # ---- per-generation, intermediate-aware tile sizing --------------------
    x_item = jnp.dtype(x.dtype).itemsize
    try:
        vmem_phys = int(pltpu.get_tpu_info().vmem_capacity_bytes)
    except Exception:
        vmem_phys = 64 * 1024 * 1024          # conservative fallback (v7x size)
    vmem_budget = min((vmem_phys * 3) // 8, 40 * 1024 * 1024)

    f32_row = 128 * 4
    bytes_per_row = (
        2 * 128 * (C * x_item + 4)            # double-buffered logits + targets
        + 3 * C * f32_row                     # f32 upcast / shifted / exp temps
        + 8 * f32_row                         # per-position temporaries & masks
    )
    tr_cap = max(8, (vmem_budget // bytes_per_row) // 8 * 8)

    if R <= tr_cap:
        tr, n_tiles = R, 1                    # full dim -> no (8,128) constraint
    else:
        n_tiles = -(-R // tr_cap)             # ceil
        tr = -(-R // n_tiles)                 # balanced rows per tile
        tr = -(-tr // 8) * 8                  # sublane multiple (<= tr_cap)
        n_tiles = -(-R // tr)
    needs_mask = (n_tiles * tr) != R

    est_vmem = tr * bytes_per_row + (1 << 20)
    vmem_limit = int(min(vmem_phys * 7 // 8, est_vmem + (16 << 20)))

    kernel = functools.partial(
        _wce_kernel, n_classes=C, n_valid_rows=R,
        rows_per_tile=tr, needs_mask=needs_mask)

    loss_parts, w_parts = pl.pallas_call(
        kernel,
        out_shape=(
            jax.ShapeDtypeStruct((N, n_tiles, 1, 1), jnp.float32),
            jax.ShapeDtypeStruct((N, n_tiles, 1, 1), jnp.float32),
        ),
        grid=(N, n_tiles),
        in_specs=[
            pl.BlockSpec(memory_space=pltpu.MemorySpace.SMEM),        # class weights
            pl.BlockSpec((1, C, tr, 128), lambda n, s: (n, 0, s, 0)),  # logits tile
            pl.BlockSpec((1, tr, 128), lambda n, s: (n, s, 0)),        # targets tile
        ],
        out_specs=(
            pl.BlockSpec((1, 1, 1, 1), lambda n, s: (n, s, 0, 0)),
            pl.BlockSpec((1, 1, 1, 1), lambda n, s: (n, s, 0, 0)),
        ),
        compiler_params=pltpu.CompilerParams(
            dimension_semantics=("parallel", "parallel"),
            vmem_limit_bytes=vmem_limit,
        ),
    )(w, x, t)

    return jnp.sum(loss_parts) / jnp.sum(w_parts)


def _reference(logits_nchw, targets_nhw, class_weights):
    """Pure-JAX reference matching torch.nn.CrossEntropyLoss(weight=w)."""
    N, C, H, W = logits_nchw.shape
    x = jnp.transpose(logits_nchw, (0, 2, 3, 1)).reshape(-1, C).astype(jnp.float32)
    t = targets_nhw.reshape(-1).astype(jnp.int32)
    logp = jax.nn.log_softmax(x, axis=-1)
    nll = -jnp.take_along_axis(logp, t[:, None], axis=-1)[:, 0]
    wt = class_weights[t]
    return jnp.sum(wt * nll) / jnp.sum(wt)


if __name__ == "__main__":
    # Deterministic class weights (the module would load these from a file;
    # here they are synthesized in-script).
    N, C, H, W = 2, 4, 16, 16
    class_weights = jnp.linspace(0.5, 1.5, C, dtype=jnp.float32)

    key = jax.random.PRNGKey(0)
    k1, k2 = jax.random.split(key)
    logits = jax.random.normal(k1, (N, C, H, W), dtype=jnp.float32)
    targets = jax.random.randint(k2, (N, H, W), 0, C, dtype=jnp.int32)

    out = weighted_cross_entropy(logits, targets, class_weights)
    out = jax.block_until_ready(out)

    ref = _reference(logits, targets, class_weights)
    assert jnp.allclose(out, ref, rtol=1e-5, atol=1e-5), (out, ref)

    print("KERNEL_OK")
</pallas_src>

<mosaic_0001>
module attributes {stable_mosaic.version = 11 : i64} {
  func.func @_wce_kernel(%arg0: i32, %arg1: i32, %arg2: memref<4xf32, #tpu.memory_space<smem>>, %arg3: memref<1x4x2x128xf32, #tpu.memory_space<vmem>>, %arg4: memref<1x2x128xi32, #tpu.memory_space<vmem>>, %arg5: memref<1x1x1x1xf32, #tpu.memory_space<vmem>>, %arg6: memref<1x1x1x1xf32, #tpu.memory_space<vmem>>) attributes {dimension_semantics = [#tpu.dimension_semantics<parallel>, #tpu.dimension_semantics<parallel>], iteration_bounds = array<i64: 2, 1>, scalar_prefetch = 0 : i64, scratch_operands = 0 : i64, tpu.core_type = #tpu.core_type<tc>, window_params = [{transform_indices = @transform_0, window_bounds = array<i64: 4>}, {transform_indices = @transform_1, window_bounds = array<i64: 1, 4, 2, 128>}, {transform_indices = @transform_2, window_bounds = array<i64: 1, 2, 128>}, {transform_indices = @transform_3, window_bounds = array<i64: 1, 1, 1, 1>}, {transform_indices = @transform_4, window_bounds = array<i64: 1, 1, 1, 1>}]} {
    %c0 = arith.constant 0 : index
    %c0_0 = arith.constant 0 : index
    %c0_1 = arith.constant 0 : index
    %c0_2 = arith.constant 0 : index
    %0 = vector.load %arg3[%c0, %c0_0, %c0_1, %c0_2] : memref<1x4x2x128xf32, #tpu.memory_space<vmem>>, vector<1x4x2x128xf32>
    %1 = vector.shape_cast %0 : vector<1x4x2x128xf32> to vector<4x2x128xf32>
    %c0_3 = arith.constant 0 : index
    %c0_4 = arith.constant 0 : index
    %c0_5 = arith.constant 0 : index
    %2 = vector.load %arg4[%c0_3, %c0_4, %c0_5] : memref<1x2x128xi32, #tpu.memory_space<vmem>>, vector<1x2x128xi32>
    %3 = vector.shape_cast %2 : vector<1x2x128xi32> to vector<2x128xi32>
    %cst = arith.constant dense<0xFF800000> : vector<2x128xf32>
    %4 = vector.multi_reduction <maximumf>, %1, %cst [0] : vector<4x2x128xf32> to vector<2x128xf32>
    %5 = vector.shape_cast %4 : vector<2x128xf32> to vector<1x2x128xf32>
    %6 = vector.broadcast %5 : vector<1x2x128xf32> to vector<4x2x128xf32>
    %7 = arith.subf %1, %6 : vector<4x2x128xf32>
    %8 = math.exp %7 : vector<4x2x128xf32>
    %cst_6 = arith.constant dense<0.000000e+00> : vector<2x128xf32>
    %9 = vector.multi_reduction <add>, %8, %cst_6 [0] : vector<4x2x128xf32> to vector<2x128xf32>
    %10 = math.log %9 : vector<2x128xf32>
    %cst_7 = arith.constant 0.000000e+00 : f32
    %11 = vector.broadcast %cst_7 : f32 to vector<2x128xf32>
    %cst_8 = arith.constant 0.000000e+00 : f32
    %12 = vector.broadcast %cst_8 : f32 to vector<2x128xf32>
    %c0_i32 = arith.constant 0 : i32
    %13 = vector.broadcast %c0_i32 : i32 to vector<2x128xi32>
    %14 = arith.cmpi eq, %3, %13 : vector<2x128xi32>
    %15 = vector.extract_strided_slice %7 {offsets = [0, 0, 0], sizes = [1, 2, 128], strides = [1, 1, 1]} : vector<4x2x128xf32> to vector<1x2x128xf32>
    %16 = vector.shape_cast %15 : vector<1x2x128xf32> to vector<2x128xf32>
    %17 = arith.select %14, %16, %11 : vector<2x128xi1>, vector<2x128xf32>
    %c0_9 = arith.constant 0 : index
    %18 = memref.load %arg2[%c0_9] : memref<4xf32, #tpu.memory_space<smem>>
    %19 = vector.broadcast %18 : f32 to vector<2x128xf32>
    %20 = arith.select %14, %19, %12 : vector<2x128xi1>, vector<2x128xf32>
    %c1_i32 = arith.constant 1 : i32
    %21 = vector.broadcast %c1_i32 : i32 to vector<2x128xi32>
    %22 = arith.cmpi eq, %3, %21 : vector<2x128xi32>
    %23 = vector.extract_strided_slice %7 {offsets = [1, 0, 0], sizes = [1, 2, 128], strides = [1, 1, 1]} : vector<4x2x128xf32> to vector<1x2x128xf32>
    %24 = vector.shape_cast %23 : vector<1x2x128xf32> to vector<2x128xf32>
    %25 = arith.select %22, %24, %17 : vector<2x128xi1>, vector<2x128xf32>
    %c1 = arith.constant 1 : index
    %26 = memref.load %arg2[%c1] : memref<4xf32, #tpu.memory_space<smem>>
    %27 = vector.broadcast %26 : f32 to vector<2x128xf32>
    %28 = arith.select %22, %27, %20 : vector<2x128xi1>, vector<2x128xf32>
    %c2_i32 = arith.constant 2 : i32
    %29 = vector.broadcast %c2_i32 : i32 to vector<2x128xi32>
    %30 = arith.cmpi eq, %3, %29 : vector<2x128xi32>
    %31 = vector.extract_strided_slice %7 {offsets = [2, 0, 0], sizes = [1, 2, 128], strides = [1, 1, 1]} : vector<4x2x128xf32> to vector<1x2x128xf32>
    %32 = vector.shape_cast %31 : vector<1x2x128xf32> to vector<2x128xf32>
    %33 = arith.select %30, %32, %25 : vector<2x128xi1>, vector<2x128xf32>
    %c2 = arith.constant 2 : index
    %34 = memref.load %arg2[%c2] : memref<4xf32, #tpu.memory_space<smem>>
    %35 = vector.broadcast %34 : f32 to vector<2x128xf32>
    %36 = arith.select %30, %35, %28 : vector<2x128xi1>, vector<2x128xf32>
    %c3_i32 = arith.constant 3 : i32
    %37 = vector.broadcast %c3_i32 : i32 to vector<2x128xi32>
    %38 = arith.cmpi eq, %3, %37 : vector<2x128xi32>
    %39 = vector.extract_strided_slice %7 {offsets = [3, 0, 0], sizes = [1, 2, 128], strides = [1, 1, 1]} : vector<4x2x128xf32> to vector<1x2x128xf32>
    %40 = vector.shape_cast %39 : vector<1x2x128xf32> to vector<2x128xf32>
    %41 = arith.select %38, %40, %33 : vector<2x128xi1>, vector<2x128xf32>
    %c3 = arith.constant 3 : index
    %42 = memref.load %arg2[%c3] : memref<4xf32, #tpu.memory_space<smem>>
    %43 = vector.broadcast %42 : f32 to vector<2x128xf32>
    %44 = arith.select %38, %43, %36 : vector<2x128xi1>, vector<2x128xf32>
    %45 = arith.subf %10, %41 : vector<2x128xf32>
    %46 = arith.mulf %44, %45 : vector<2x128xf32>
    %47 = vector.shape_cast %46 : vector<2x128xf32> to vector<1x2x128xf32>
    %cst_10 = arith.constant dense<0.000000e+00> : vector<1xf32>
    %48 = vector.multi_reduction <add>, %47, %cst_10 [1, 2] : vector<1x2x128xf32> to vector<1xf32>
    %49 = vector.shape_cast %48 : vector<1xf32> to vector<1x1x1xf32>
    %50 = vector.extract %49[0, 0, 0] : f32 from vector<1x1x1xf32>
    %51 = vector.broadcast %50 : f32 to vector<1x1x1x1xf32>
    %c0_11 = arith.constant 0 : index
    %c0_12 = arith.constant 0 : index
    %c0_13 = arith.constant 0 : index
    %c0_14 = arith.constant 0 : index
    %52 = vector.load %arg5[%c0_11, %c0_12, %c0_13, %c0_14] : memref<1x1x1x1xf32, #tpu.memory_space<vmem>>, vector<1x1x1x1xf32>
    tpu.vector_store %arg5[%c0_11, %c0_12, %c0_13, %c0_14], %51 {strides = array<i32>} : memref<1x1x1x1xf32, #tpu.memory_space<vmem>>, vector<1x1x1x1xf32>,
    %53 = vector.shape_cast %44 : vector<2x128xf32> to vector<1x2x128xf32>
    %cst_15 = arith.constant dense<0.000000e+00> : vector<1xf32>
    %54 = vector.multi_reduction <add>, %53, %cst_15 [1, 2] : vector<1x2x128xf32> to vector<1xf32>
    %55 = vector.shape_cast %54 : vector<1xf32> to vector<1x1x1xf32>
    %56 = vector.extract %55[0, 0, 0] : f32 from vector<1x1x1xf32>
    %57 = vector.broadcast %56 : f32 to vector<1x1x1x1xf32>
    %c0_16 = arith.constant 0 : index
    %c0_17 = arith.constant 0 : index
    %c0_18 = arith.constant 0 : index
    %c0_19 = arith.constant 0 : index
    %58 = vector.load %arg6[%c0_16, %c0_17, %c0_18, %c0_19] : memref<1x1x1x1xf32, #tpu.memory_space<vmem>>, vector<1x1x1x1xf32>
    tpu.vector_store %arg6[%c0_16, %c0_17, %c0_18, %c0_19], %57 {strides = array<i32>} : memref<1x1x1x1xf32, #tpu.memory_space<vmem>>, vector<1x1x1x1xf32>,
    return
  }
  func.func @transform_0(%arg0: i32, %arg1: i32) -> i32 {
    %c0_i32 = arith.constant 0 : i32
    %c0_i32_0 = arith.constant 0 : i32
    return %c0_i32 : i32
  }
  func.func @transform_1(%arg0: i32, %arg1: i32) -> (i32, i32, i32, i32) {
    %c0_i32 = arith.constant 0 : i32
    %c0_i32_0 = arith.constant 0 : i32
    %c0_i32_1 = arith.constant 0 : i32
    return %arg0, %c0_i32, %arg1, %c0_i32_0 : i32, i32, i32, i32
  }
  func.func @transform_2(%arg0: i32, %arg1: i32) -> (i32, i32, i32) {
    %c0_i32 = arith.constant 0 : i32
    %c0_i32_0 = arith.constant 0 : i32
    return %arg0, %arg1, %c0_i32 : i32, i32, i32
  }
  func.func @transform_3(%arg0: i32, %arg1: i32) -> (i32, i32, i32, i32) {
    %c0_i32 = arith.constant 0 : i32
    %c0_i32_0 = arith.constant 0 : i32
    %c0_i32_1 = arith.constant 0 : i32
    return %arg0, %arg1, %c0_i32, %c0_i32_0 : i32, i32, i32, i32
  }
  func.func @transform_4(%arg0: i32, %arg1: i32) -> (i32, i32, i32, i32) {
    %c0_i32 = arith.constant 0 : i32
    %c0_i32_0 = arith.constant 0 : i32
    %c0_i32_1 = arith.constant 0 : i32
    return %arg0, %arg1, %c0_i32, %c0_i32_0 : i32, i32, i32, i32
  }
}

</mosaic_0001>

<bundles_post_ra>
// kernel: weighted_cross_entropy.1
= control target key start
LH: loop header
LB: loop body
LE: loop exit
PB: predicated region body
PF: predicated region fallthrough
CT: control target
= control target key end

     0   :  { %10 = vsyncpa [#allocation3], 0  ;;  %s633_s15 = smov 0   ;;  %s635_s16 = smov 0   ;;  %s714_s0 = inlined_call_operand.vmem [shape: f32[4], index: 0, kind: input, shape index: {}]   ;;  %s715_s1 = inlined_call_operand.vmem [shape: f32[2,4,2,128], index: 1, kind: input, shape index: {}]   ;;  %s716_s2 = inlined_call_operand.vmem [shape: s32[2,2,128], index: 2, kind: input, shape index: {}]   ;;  %s717_s3 = inlined_call_operand.vmem [shape: f32[2,1,1,1], index: 3, kind: output, shape index: {0}]   ;;  %s718_s4 = inlined_call_operand.vmem [shape: f32[2,1,1,1], index: 4, kind: output, shape index: {1}]  }
   0x1   :  { %s637_s17 = smov 0  }
   0x2 LB: > { %s499_s18 = sadd.s32 4294967295, %s605_s17   ;;  %s28_s19 = sadd.s32 1, %s601_s16  ;;  %s605_s17 = sphi %s637_s17, %s16_s17   ;;  %s601_s16 = sphi %s635_s16, %s722_s16   ;;  %s597_s15 = sphi %s633_s15, %s721_s15  }
   0x3   : > { %p30_p0 = scmp.ge.s32.totalorder %s28_s19, 2  ;;  %p501_p1 = scmp.ge.s32.totalorder %s605_s17, 1 }
   0x4   : > { %p166_p2 = scmp.lt.s32.totalorder %s605_s17, 3  ;;  %p658_p4 = scmp.eq.s32.totalorder %s499_s18, 0 }
   0x5   : > { %s724_s19 = smov (%p30_p0, %s28_s19), 0  ;;  %s179_s24 = sshll.u32 %s714_s0, 4  ;;  %s180_s24 = int_to_ptr.vmem [resolvable:$true] %s179_s24 }
   0x6   : > { %p654_p3 = pnand %p501_p1, %p166_p2  ;;  %s564_s25 = scalar_lea.vmem %s180_s24, 16 }
   0x7   : > { %p565_p7 = scmp.ne.s32.totalorder %s180_s24, %s564_s25  ;;  %p572_p11 = scmp.lt.s32.totalorder %s180_s24, %s180_s24 }
   0x8   : > { %p523_p5 = pneg %p654_p3  ;;  %p573_p12 = scmp.lt.s32.totalorder %s564_s25, %s564_s25 }
   0xa   : > { %p524_p6 = pnand %p658_p4, %p523_p5  ;;  %p574_p13 = por %p573_p12, %p572_p11 }
   0xc   : > { %p566_p8 = pneg %p524_p6 }
   0xe   : > { %p567_p9 = pnand %p566_p8, %p565_p7 }
  0x10   : > { %p568_p10 = pneg %p567_p9 }
  0x12   : > { %p575_p0 = pnand %p574_p13, %p568_p10 }
  0x14   : > { %578 = shalt.err (!%p575_p0)
}
  0x15   : > { %s607_s26 = smov [#allocation2]   ;;  %213 = sbr.rel (%p654_p3) target bundleno = 294 (0x126), region = 32 }
  0x16   : > { %526 = dma.vmem_to_smem (!%p524_p6), %s180_s24, 16, %s607_s26, [#allocation3]  }
  0x1c   : > { %592 = dma.done.wait (%p658_p4), [#allocation3], 16  }
  0x1d   : > { %594 = vsyncadd (%p658_p4), [#allocation3], 4294967280 }
  0x1e   : > { %219 = sfence }
  0x1f   : > { %p257_p1 = scmp.lt.s32.totalorder %s597_s15, 1  ;;  %vm289_vm0 = vcmask 1041408   ;;  %s320_s9 = sld [smem:[#allocation2]]  ;;  %vm351_vm5 = vcmask 0  }
  0x20   : > { %s509_s10 = sld [smem:[#allocation2 + $0x1]]  ;;  %s510_s11 = sld [smem:[#allocation2 + $0x2]] }
  0x21   : > { %s726_s15 = smov (!%p257_p1, %s597_s15), 1  ;;  %s511_s12 = sld [smem:[#allocation2 + $0x3]] }
  0x22   : > { %s514_s27 = sshll.u32 %s726_s15, 3  ;;  %s508_s5 = sshll.u32 %s726_s15, 1 }
  0x23   : > { %s264_s30 = scalar_lea.vmem %s715_s1, %s514_s27  ;;  %s271_s8 = scalar_lea.vmem %s716_s2, %s508_s5 }
  0x24   : > { %v284_v0 = vld [vmem:[%s264_s30] sm:$0x3]  ;;  %v285_v1 = vld [vmem:[%s264_s30 + $0x2] sm:$0x3]  ;;  %v286_v2 = vld [vmem:[%s264_s30 + $0x4] sm:$0x3]  ;;  %s277_s18 = scalar_lea.vmem %s717_s3, %s726_s15  ;;  %s283_s23 = scalar_lea.vmem %s718_s4, %s726_s15 }
  0x25   : > { %v287_v3 = vld [vmem:[%s264_s30 + $0x6] sm:$0x3]  ;;  %v290_v4 = vsel %vm289_vm0, %v284_v0, -inf  ;;  %v291_v5 = vsel %vm289_vm0, %v285_v1, -inf  ;;  %v292_v6 = vsel %vm289_vm0, %v286_v2, -inf  ;;  %v321_v31 = vstv %s320_s9 }
  0x26   : > { %v293_v7 = vsel %vm289_vm0, %v287_v3, -inf  ;;  %v294_v8 = vmax.f32 %v290_v4, %v291_v5  ;;  %v288_v27 = vld [vmem:[%s271_s8] sm:$0x3]  ;;  %v326_v34 = vstv %s509_s10  ;;  %v331_v37 = vstv %s510_s11 }
  0x27   : > { %v295_v9 = vmax.f32 %v292_v6, %v293_v7  ;;  %vm318_vm1 = vcmp.eq.s32.totalorder %v288_v27, 0  ;;  %vm323_vm2 = vcmp.eq.s32.totalorder %v288_v27, 1  ;;  %vm328_vm3 = vcmp.eq.s32.totalorder %v288_v27, 2 }
  0x28   : > { %v322_v33 = vsel %vm318_vm1, %v321_v31, 0.0  ;;  %vm333_vm4 = vcmp.eq.s32.totalorder %v288_v27, 3  ;;  %v336_v40 = vstv %s511_s12 }
  0x29   : > { %v296_v10 = vmax.f32 %v294_v8, %v295_v9  ;;  %v327_v36 = vsel %vm323_vm2, %v326_v34, %v322_v33 }
  0x2a   : > { %v332_v39 = vsel %vm328_vm3, %v331_v37, %v327_v36 }
  0x2b   : > { %v297_v11 = vsub.f32 %v284_v0, %v296_v10  ;;  %v298_v12 = vsub.f32 %v285_v1, %v296_v10  ;;  %v299_v13 = vsub.f32 %v286_v2, %v296_v10  ;;  %v300_v14 = vsub.f32 %v287_v3, %v296_v10 }
  0x2c   : > { %v337_v44 = vsel %vm333_vm4, %v336_v40, %v332_v39 }
  0x2d   : > { %v301_v15 = vmul.f32 1.442695, %v297_v11  ;;  %v303_v16 = vmul.f32 1.442695, %v298_v12  ;;  %v305_v17 = vmul.f32 1.442695, %v299_v13 }
  0x2e   : > { %v307_v18 = vmul.f32 1.442695, %v300_v14  ;;  %v319_v32 = vsel %vm318_vm1, %v297_v11, 0.0  ;;  %v353_v48 = vsel %vm289_vm0, %v337_v44, 0.0 }
  0x2f   : > { %554 = vpow2.f32 %v301_v15  ;;  %v324_v35 = vsel %vm323_vm2, %v298_v12, %v319_v32 }
  0x30   : > { %556 = vpow2.f32 %v303_v16  ;;  %v329_v38 = vsel %vm328_vm3, %v299_v13, %v324_v35 }
  0x31   : > { %558 = vpow2.f32 %v305_v17  ;;  %v334_v42 = vsel %vm333_vm4, %v300_v14, %v329_v38 }
  0x32   : > { %560 = vpow2.f32 %v307_v18 }
  0x39   : > { %v555_v19 = vpop.eup %554 }
  0x3a   : > { %v557_v20 = vpop.eup %556  ;;  %v309_v21 = vsel %vm289_vm0, %v555_v19, 0.0 }
  0x3b   : > { %v559_v22 = vpop.eup %558  ;;  %v310_v23 = vsel %vm289_vm0, %v557_v20, 0.0 }
  0x3c   : > { %v561_v24 = vpop.eup %560  ;;  %v311_v25 = vadd.f32 %v310_v23, %v309_v21  ;;  %v312_v26 = vsel %vm289_vm0, %v559_v22, 0.0 }
  0x3d   : > { %v314_v28 = vsel %vm289_vm0, %v561_v24, 0.0 }
  0x3e   : > { %v313_v29 = vadd.f32 %v312_v26, %v311_v25 }
  0x40   : > { %v315_v30 = vadd.f32 %v314_v28, %v313_v29 }
  0x42   : > { %562 = vlog2.f32 %v315_v30 }
  0x4c   : > { %v563_v41 = vpop.eup %562 }
  0x4d   : > { %v317_v43 = vmul.f32 0.6931472, %v563_v41 }
  0x4f   : > { %v338_v45 = vsub.f32 %v317_v43, %v334_v42 }
  0x51   : > { %v339_v46 = vmul.f32 %v338_v45, %v337_v44 }
  0x53   : > { %v340_v47 = vsel %vm289_vm0, %v339_v46, 0.0 }
  0x54   : > { %341 = vadd.xlane.f32.xlu0 %v340_v47 }
  0x58   : > { %354 = vadd.xlane.f32.xlu0 %v353_v48 }
  0xe1   : > { %v342_v49 = vpop.xlane.xlu0 %341 }
  0xe2   : > { %v343_v50 = vrot.slane %v342_v49, 4 }
  0xe4   : > { %v344_v51 = vadd.f32 %v343_v50, %v342_v49 }
  0xe5   : > { %v355_v52 = vpop.xlane.xlu0 %354 }
  0xe6   : > { %v345_v53 = vrot.slane %v344_v51, 2  ;;  %v356_v54 = vrot.slane %v355_v52, 4 }
  0xe8   : > { %v357_v55 = vadd.f32 %v356_v54, %v355_v52  ;;  %v346_v56 = vadd.f32 %v345_v53, %v344_v51 }
  0xea   : > { %v358_v57 = vrot.slane %v357_v55, 2  ;;  %v347_v58 = vrot.slane %v346_v56, 1 }
  0xec   : > { %v359_v59 = vadd.f32 %v358_v57, %v357_v55  ;;  %v348_v60 = vadd.f32 %v347_v58, %v346_v56 }
  0xee   : > { %515 = vpush %v348_v60  ;;  %v360_v61 = vrot.slane %v359_v59, 1 }
  0xf0   : > { %v361_v62 = vadd.f32 %v360_v61, %v359_v59 }
  0xf2   : > { %517 = vpush %v361_v62 }
 0x11f   : > { %s516_s20 = spop %515 }
 0x120   : > { %v350_v63 = vstv %s516_s20 }
 0x121   : > { %352 = vst.msk [vmem:[%s277_s18] sm:$0x1] %vm351_vm5, %v350_v63 }
 0x123   : > { %s518_s24 = spop %517 }
 0x124   : > { %v363_v0 = vstv %s518_s24 }
 0x125   : > { %364 = vst.msk [vmem:[%s283_s23] sm:$0x1] %vm351_vm5, %v363_v0 }
 0x126 PF: > { %s16_s17 = sadd.s32 1, %s605_s17   ;;  %s721_s15 = smov %s601_s16 }
 0x127   : > { %p13_p2 = scmp.ge.s32.totalorder %s16_s17, 4   ;;  %s722_s16 = smov %s724_s19 }
 0x129   :  { %15 = sbr.rel (!%p13_p2) target bundleno = 2 (0x2), region = 82 }
 0x130   :  { %406 = vsyncpa [#allocation3], 1 }
 0x131   :  { %408 = vsyncpa [#allocation3 + $0x1], 1 }

</bundles_post_ra>
